<compile_context>
chip_gen: v7x
topology: tpu7x:2x2x1
jax: 0.10.0
libtpu: 0.0.40
codegen_flags: <defaults>
</compile_context>

<pallas_src>
import jax
import jax.numpy as jnp
from jax.experimental import pallas as pl
from jax.experimental.pallas import tpu as pltpu

LANE = 128
SUBLANE = 8


def _round_up(x, m):
    return (x + m - 1) // m * m


def bpnet_kernel(x_ref, w1_ref, b1_ref, w2_ref, b2_ref, o_ref):
    # fc1: (TB, In) @ (In, H), f32 accumulation on the MXU.
    h = jnp.dot(x_ref[...], w1_ref[...], preferred_element_type=jnp.float32)
    # bias + ReLU in f32 on the VPU (bias row broadcasts over the batch tile).
    h = jnp.maximum(h + b1_ref[...], 0.0)
    # fc2: (TB, H) @ (H, OutPad), f32 accumulation.
    y = jnp.dot(h.astype(w2_ref.dtype), w2_ref[...],
                preferred_element_type=jnp.float32)
    y = y + b2_ref[...]
    # Sigmoid: exp and approximate reciprocal both land on the EUP slot.
    e = jnp.exp(-y)
    o_ref[...] = pl.reciprocal(1.0 + e, approx=True).astype(o_ref.dtype)


def bpnet_forward(x, w1, b1, w2, b2, *, matmul_dtype=jnp.float32,
                  block_batch=1024):
    """sigmoid(relu(x @ w1 + b1) @ w2 + b2).

    x: (B, In) f32, w1: (In, H), b1: (1, H), w2: (H, Out), b2: (1, Out).
    `matmul_dtype=jnp.bfloat16` halves HBM traffic for x / weights on v6e/v7x;
    accumulation and the elementwise epilogue remain float32.
    """
    B, in_num = x.shape
    hide_num, out_num = w2.shape

    # --- Lane-dense output: pad the output feature dim to a multiple of 128
    # so the final store is a full vst instead of a 4-of-128 masked store.
    out_pad = _round_up(out_num, LANE)
    if out_pad != out_num:
        w2 = jnp.pad(w2, ((0, 0), (0, out_pad - out_num)))
        b2 = jnp.pad(b2, ((0, 0), (0, out_pad - out_num)))

    # --- Batch tile. Padded VMEM footprint per row is ~1 KiB, so TB=1024 with
    # double buffering is ~2 MiB and fits the *default* scoped VMEM on v5e
    # (16 MiB), v6e (32 MiB) and v7x (32 MiB) with plenty of headroom.
    tb = _round_up(min(block_batch, _round_up(B, SUBLANE)), SUBLANE)
    b_pad = _round_up(B, tb)
    if b_pad != B:
        x = jnp.pad(x, ((0, b_pad - B), (0, 0)))

    # --- Matmul operand dtype (bf16 recommended on v6e/v7x). Biases / epilogue
    # stay f32 (v5e has no bf16 VPU/EUP fast path).
    if x.dtype != matmul_dtype:
        x = x.astype(matmul_dtype)
    w1 = w1.astype(matmul_dtype)
    w2 = w2.astype(matmul_dtype)
    b1 = b1.astype(jnp.float32)
    b2 = b2.astype(jnp.float32)

    grid = (b_pad // tb,)

    # Weights / biases: constant index_map -> loaded once, VMEM-resident
    # across every batch tile.
    def resident(shape):
        return pl.BlockSpec(shape, lambda i: (0, 0))

    mbytes = jnp.dtype(matmul_dtype).itemsize
    cost = pl.CostEstimate(
        flops=2 * b_pad * (in_num * hide_num + hide_num * out_pad),
        transcendentals=b_pad * out_pad,
        bytes_accessed=(b_pad * in_num * mbytes                      # x
                        + b_pad * out_pad * 4                        # out (f32)
                        + (in_num * hide_num + hide_num * out_pad) * mbytes
                        + (hide_num + out_pad) * 4),                 # biases
    )

    out = pl.pallas_call(
        bpnet_kernel,
        out_shape=jax.ShapeDtypeStruct((b_pad, out_pad), jnp.float32),
        grid=grid,
        in_specs=[
            pl.BlockSpec((tb, in_num), lambda i: (i, 0)),
            resident(w1.shape),
            resident(b1.shape),
            resident(w2.shape),
            resident(b2.shape),
        ],
        out_specs=pl.BlockSpec((tb, out_pad), lambda i: (i, 0)),
        compiler_params=pltpu.CompilerParams(
            dimension_semantics=("parallel",)),   # megacore sharding on v7x
        cost_estimate=cost,
    )(x, w1, b1, w2, b2)

    return out[:B, :out_num]


def init_bpnet_params(key, input_num, hide_num, output_num):
    """Deterministic init mimicking nn.Linear's uniform(-1/sqrt(fan_in), +)."""
    k1, k2, k3, k4 = jax.random.split(key, 4)
    bound1 = 1.0 / jnp.sqrt(input_num)
    bound2 = 1.0 / jnp.sqrt(hide_num)
    # stored already transposed: (in, out)
    w1 = jax.random.uniform(k1, (input_num, hide_num), jnp.float32,
                            -bound1, bound1)
    b1 = jax.random.uniform(k2, (1, hide_num), jnp.float32, -bound1, bound1)
    w2 = jax.random.uniform(k3, (hide_num, output_num), jnp.float32,
                            -bound2, bound2)
    b2 = jax.random.uniform(k4, (1, output_num), jnp.float32, -bound2, bound2)
    return w1, b1, w2, b2


if __name__ == "__main__":
    # TODO(synk): only the forward pass is implemented; the training loop /
    # optimizer / DataLoader from the original script is out of scope for a
    # Pallas kernel.
    key = jax.random.PRNGKey(0)
    kx, kp, kx2 = jax.random.split(key, 3)

    # Small shapes consistent with the module: batch=8, input=16, hidden=32, out=4
    batch, input_num, hide_num, output_num = 8, 16, 32, 4
    x = jax.random.normal(kx, (batch, input_num), jnp.float32)
    w1, b1, w2, b2 = init_bpnet_params(kp, input_num, hide_num, output_num)

    # f32 path (single tile).
    out = bpnet_forward(x, w1, b1, w2, b2)
    out = jax.block_until_ready(out)
    ref = jax.nn.sigmoid(jnp.maximum(x @ w1 + b1, 0.0) @ w2 + b2)
    assert out.shape == (batch, output_num)
    # approx reciprocal in the sigmoid => slightly looser tolerance than exact.
    assert jnp.allclose(out, ref, atol=5e-3, rtol=5e-3), "f32 path mismatch"

    # Multi-tile + batch-padding path (grid of 4 tiles, batch not tile-aligned),
    # bf16 matmul operands as used on v6e/v7x.
    big_b = 1000
    xb = jax.random.normal(kx2, (big_b, input_num), jnp.float32)
    out_b = bpnet_forward(xb, w1, b1, w2, b2,
                          matmul_dtype=jnp.bfloat16, block_batch=256)
    out_b = jax.block_until_ready(out_b)
    hb = jnp.maximum(
        jnp.dot(xb.astype(jnp.bfloat16), w1.astype(jnp.bfloat16),
                preferred_element_type=jnp.float32) + b1, 0.0)
    yb = jnp.dot(hb.astype(jnp.bfloat16), w2.astype(jnp.bfloat16),
                 preferred_element_type=jnp.float32) + b2
    ref_b = jax.nn.sigmoid(yb)
    assert out_b.shape == (big_b, output_num)
    assert jnp.allclose(out_b, ref_b, atol=2e-2, rtol=2e-2), "bf16 path mismatch"

    print("KERNEL_OK")
</pallas_src>

<mosaic_0001>
module attributes {stable_mosaic.version = 11 : i64} {
  func.func @bpnet_kernel(%arg0: i32, %arg1: memref<8x16xf32, #tpu.memory_space<vmem>>, %arg2: memref<16x32xf32, #tpu.memory_space<vmem>>, %arg3: memref<1x32xf32, #tpu.memory_space<vmem>>, %arg4: memref<32x128xf32, #tpu.memory_space<vmem>>, %arg5: memref<1x128xf32, #tpu.memory_space<vmem>>, %arg6: memref<8x128xf32, #tpu.memory_space<vmem>>) attributes {dimension_semantics = [#tpu.dimension_semantics<parallel>], iteration_bounds = array<i64: 1>, scalar_prefetch = 0 : i64, scratch_operands = 0 : i64, tpu.core_type = #tpu.core_type<tc>, window_params = [{transform_indices = @transform_0, window_bounds = array<i64: 8, 16>}, {pipeline_mode = #tpu.pipeline_mode<synchronous>, transform_indices = @transform_1, window_bounds = array<i64: 16, 32>}, {pipeline_mode = #tpu.pipeline_mode<synchronous>, transform_indices = @transform_2, window_bounds = array<i64: 1, 32>}, {pipeline_mode = #tpu.pipeline_mode<synchronous>, transform_indices = @transform_3, window_bounds = array<i64: 32, 128>}, {pipeline_mode = #tpu.pipeline_mode<synchronous>, transform_indices = @transform_4, window_bounds = array<i64: 1, 128>}, {transform_indices = @transform_5, window_bounds = array<i64: 8, 128>}]} {
    %c0 = arith.constant 0 : index
    %c0_0 = arith.constant 0 : index
    %0 = vector.load %arg1[%c0, %c0_0] : memref<8x16xf32, #tpu.memory_space<vmem>>, vector<8x16xf32>
    %c0_1 = arith.constant 0 : index
    %c0_2 = arith.constant 0 : index
    %1 = vector.load %arg2[%c0_1, %c0_2] : memref<16x32xf32, #tpu.memory_space<vmem>>, vector<16x32xf32>
    %cst = arith.constant dense<0.000000e+00> : vector<8x32xf32>
    %2 = tpu.matmul %0, %1, %cst {dimension_numbers = #tpu.dot_dimension_numbers<[1], [0], [0], [1], [0, 0, 1, 1], [], []>} : vector<8x16xf32>, vector<16x32xf32>, vector<8x32xf32> -> vector<8x32xf32>
    %c0_3 = arith.constant 0 : index
    %c0_4 = arith.constant 0 : index
    %3 = vector.load %arg3[%c0_3, %c0_4] : memref<1x32xf32, #tpu.memory_space<vmem>>, vector<1x32xf32>
    %4 = vector.broadcast %3 : vector<1x32xf32> to vector<8x32xf32>
    %5 = arith.addf %2, %4 : vector<8x32xf32>
    %cst_5 = arith.constant 0.000000e+00 : f32
    %6 = vector.broadcast %cst_5 : f32 to vector<8x32xf32>
    %7 = arith.maximumf %5, %6 : vector<8x32xf32>
    %c0_6 = arith.constant 0 : index
    %c0_7 = arith.constant 0 : index
    %8 = vector.load %arg4[%c0_6, %c0_7] : memref<32x128xf32, #tpu.memory_space<vmem>>, vector<32x128xf32>
    %cst_8 = arith.constant dense<0.000000e+00> : vector<8x128xf32>
    %9 = tpu.matmul %7, %8, %cst_8 {dimension_numbers = #tpu.dot_dimension_numbers<[1], [0], [0], [1], [0, 0, 1, 1], [], []>} : vector<8x32xf32>, vector<32x128xf32>, vector<8x128xf32> -> vector<8x128xf32>
    %c0_9 = arith.constant 0 : index
    %c0_10 = arith.constant 0 : index
    %10 = vector.load %arg5[%c0_9, %c0_10] : memref<1x128xf32, #tpu.memory_space<vmem>>, vector<1x128xf32>
    %11 = vector.broadcast %10 : vector<1x128xf32> to vector<8x128xf32>
    %12 = arith.addf %9, %11 : vector<8x128xf32>
    %cst_11 = arith.constant 0.000000e+00 : f32
    %13 = vector.broadcast %cst_11 : f32 to vector<8x128xf32>
    %14 = arith.subf %13, %12 : vector<8x128xf32>
    %15 = math.exp %14 : vector<8x128xf32>
    %cst_12 = arith.constant 1.000000e+00 : f32
    %16 = vector.broadcast %cst_12 : f32 to vector<8x128xf32>
    %17 = arith.addf %16, %15 : vector<8x128xf32>
    %18 = tpu.reciprocal %17 {approx = true} : vector<8x128xf32> -> vector<8x128xf32>
    %c0_13 = arith.constant 0 : index
    %c0_14 = arith.constant 0 : index
    %19 = vector.load %arg6[%c0_13, %c0_14] : memref<8x128xf32, #tpu.memory_space<vmem>>, vector<8x128xf32>
    tpu.vector_store %arg6[%c0_13, %c0_14], %18 {strides = array<i32>} : memref<8x128xf32, #tpu.memory_space<vmem>>, vector<8x128xf32>,
    return
  }
  func.func @transform_0(%arg0: i32) -> (i32, i32) {
    %c0_i32 = arith.constant 0 : i32
    %c0_i32_0 = arith.constant 0 : i32
    return %arg0, %c0_i32 : i32, i32
  }
  func.func @transform_1(%arg0: i32) -> (i32, i32) {
    %c0_i32 = arith.constant 0 : i32
    %c0_i32_0 = arith.constant 0 : i32
    %c0_i32_1 = arith.constant 0 : i32
    return %c0_i32, %c0_i32_0 : i32, i32
  }
  func.func @transform_2(%arg0: i32) -> (i32, i32) {
    %c0_i32 = arith.constant 0 : i32
    %c0_i32_0 = arith.constant 0 : i32
    %c0_i32_1 = arith.constant 0 : i32
    return %c0_i32, %c0_i32_0 : i32, i32
  }
  func.func @transform_3(%arg0: i32) -> (i32, i32) {
    %c0_i32 = arith.constant 0 : i32
    %c0_i32_0 = arith.constant 0 : i32
    %c0_i32_1 = arith.constant 0 : i32
    return %c0_i32, %c0_i32_0 : i32, i32
  }
  func.func @transform_4(%arg0: i32) -> (i32, i32) {
    %c0_i32 = arith.constant 0 : i32
    %c0_i32_0 = arith.constant 0 : i32
    %c0_i32_1 = arith.constant 0 : i32
    return %c0_i32, %c0_i32_0 : i32, i32
  }
  func.func @transform_5(%arg0: i32) -> (i32, i32) {
    %c0_i32 = arith.constant 0 : i32
    %c0_i32_0 = arith.constant 0 : i32
    return %arg0, %c0_i32 : i32, i32
  }
}

</mosaic_0001>

<bundles_post_ra>
// kernel: tpu_custom_call.1
= control target key start
LH: loop header
LB: loop body
LE: loop exit
PB: predicated region body
PF: predicated region fallthrough
CT: control target
= control target key end

     0   :  { %10 = vsyncpa [#allocation3], 0  ;;  %s497_s0 = inlined_call_operand.hbm [shape: f32[8,16], index: 0, kind: input, shape index: {}]   ;;  %s498_s1 = inlined_call_operand.hbm [shape: f32[16,32], index: 1, kind: input, shape index: {}]   ;;  %s499_s2 = inlined_call_operand.vmem [shape: f32[1,32], index: 2, kind: input, shape index: {}]   ;;  %s500_s3 = inlined_call_operand.hbm [shape: f32[32,128], index: 3, kind: input, shape index: {}]   ;;  %s501_s4 = inlined_call_operand.vmem [shape: f32[1,128], index: 4, kind: input, shape index: {}]   ;;  %s502_s5 = inlined_call_operand.hbm [shape: f32[8,128], index: 5, kind: output, shape index: {}]  }
   0x1   :  { %11 = vsyncpa [#allocation6], 0 }
   0x2   :  { %12 = vsyncpa [#allocation4], 0  ;;  %s398_s18 = smov [#allocation5]   ;;  %s304_s22 = scalar_lea.hbm %s498_s1, 256 }
   0x3   :  { %s28_s19 = sshll.u32 %s398_s18, 4  ;;  %p305_p0 = scmp.ne.s32.totalorder %s498_s1, %s304_s22  ;;  %s29_s19 = int_to_ptr.vmem [resolvable:$true] %s28_s19 }
   0x4   :  { %p308_p1 = scmp.lt.u32.totalorder %s304_s22, %s498_s1 }
   0x6   :  { %p310_p2 = pnand %p308_p1, %p305_p0 }
   0x8   :  { %313 = shalt.err (!%p310_p2)
}
   0x9   :  { %s314_s27 = scalar_lea.vmem %s29_s19, 256  ;;  %p319_p4 = scmp.lt.s32.totalorder %s29_s19, %s29_s19 }
   0xa   :  { %p315_p3 = scmp.ne.s32.totalorder %s29_s19, %s314_s27  ;;  %p320_p5 = scmp.lt.s32.totalorder %s314_s27, %s314_s27 }
   0xc   :  { %p321_p6 = por %p320_p5, %p319_p4 }
   0xe   :  { %p322_p7 = pnand %p321_p6, %p315_p3 }
  0x10   :  { %325 = shalt.err (!%p322_p7)
}
  0x11   :  { %s399_s28 = smov 128   ;;  %s400_s29 = smov 8  }
  0x12   :  { %34 = dma.hbm_to_vmem [thread:$0]  %s498_s1, 256, %s29_s19, [#allocation6], %s399_s28, %s399_s28, %s400_s29  }
  0x13   :  { %s401_s7 = smov [#allocation2]   ;;  %s402_s9 = smov [#allocation7]  }
  0x14   :  { %s19_s8 = sshll.u32 %s401_s7, 4  ;;  %s42_s10 = sshll.u32 %s402_s9, 4  ;;  %s20_s8 = int_to_ptr.vmem [resolvable:$true] %s19_s8  ;;  %s43_s10 = int_to_ptr.vmem [resolvable:$true] %s42_s10 }
  0x15   :  { %s326_s13 = scalar_lea.hbm %s497_s0, 128 }
  0x16   :  { %p327_p8 = scmp.ne.s32.totalorder %s497_s0, %s326_s13  ;;  %p330_p9 = scmp.lt.u32.totalorder %s326_s13, %s497_s0 }
  0x18   :  { %p332_p10 = pnand %p330_p9, %p327_p8 }
  0x1a   :  { %335 = shalt.err (!%p332_p10)
}
  0x1b   :  { %s336_s1 = scalar_lea.vmem %s20_s8, 128  ;;  %p341_p12 = scmp.lt.s32.totalorder %s20_s8, %s20_s8 }
  0x1c   :  { %p337_p11 = scmp.ne.s32.totalorder %s20_s8, %s336_s1  ;;  %p342_p13 = scmp.lt.s32.totalorder %s336_s1, %s336_s1 }
  0x1e   :  { %p343_p0 = por %p342_p13, %p341_p12 }
  0x20   :  { %p344_p1 = pnand %p343_p0, %p337_p11 }
  0x22   :  { %347 = shalt.err (!%p344_p1)
}
  0x23   :  { %22 = dma.hbm_to_vmem [thread:$0]  %s497_s0, 128, %s20_s8, [#allocation3]  }
  0x24   :  { %s348_s22 = scalar_lea.hbm %s500_s3, 512 }
  0x25   :  { %p349_p2 = scmp.ne.s32.totalorder %s500_s3, %s348_s22  ;;  %p352_p3 = scmp.lt.u32.totalorder %s348_s22, %s500_s3 }
  0x27   :  { %p354_p4 = pnand %p352_p3, %p349_p2 }
  0x29   :  { %357 = shalt.err (!%p354_p4)
}
  0x2a   :  { %s358_s27 = scalar_lea.vmem %s43_s10, 512  ;;  %p363_p6 = scmp.lt.s32.totalorder %s43_s10, %s43_s10 }
  0x2b   :  { %p359_p5 = scmp.ne.s32.totalorder %s43_s10, %s358_s27  ;;  %p364_p7 = scmp.lt.s32.totalorder %s358_s27, %s358_s27 }
  0x2d   :  { %p365_p8 = por %p364_p7, %p363_p6 }
  0x2f   :  { %p366_p9 = pnand %p365_p8, %p359_p5 }
  0x31   :  { %369 = shalt.err (!%p366_p9)
}
  0x32   :  { %48 = dma.hbm_to_vmem [thread:$0]  %s500_s3, 512, %s43_s10, [#allocation6], %s399_s28, %s399_s28, %s400_s29  }
  0x33   :  { %392 = dma.done.wait [#allocation3], 128  }
  0x34   :  { %393 = vsyncadd [#allocation3], 4294967168 }
  0x35   :  { %394 = dma.done.wait [#allocation6], 768  }
  0x36   :  { %395 = vsyncadd [#allocation6], 4294966528  ;;  %v403_v0 = vmov 0.0|0.0   ;;  %vm404_vm0 = vmmov 0   ;;  %v405_v1 = vmov 0.0   ;;  %v61_v2 = vld [vmem:[#allocation5] sm:$0xff] }
  0x37   :  { %282 = vmatprep.subr.bf16.mxu0 %v403_v0  ;;  %268 = vmatprep.mubr.msk.f32.mxu0 %vm404_vm0, %v405_v1  ;;  %v62_v3 = vld [vmem:[#allocation5 + $0x8] sm:$0xff]  ;;  %v145_v5 = vld [vmem:[#allocation7] sm:$0xff]  ;;  %v146_v6 = vld [vmem:[#allocation7 + $0x8] sm:$0xff]  ;;  %vm70_vm1 = vcmask 130048   ;;  %vm156_vm2 = vcmask 261120  }
  0x38   :  { %285 = vmatprep.subr.bf16.mxu1 %v403_v0  ;;  %279 = vmatprep.mubr.msk.f32.mxu1 %vm404_vm0, %v405_v1  ;;  %v283_v4 = vpack.c.bf16 %v62_v3, %v61_v2  ;;  %v286_v7 = vpack.c.bf16 %v146_v6, %v145_v5  ;;  %v60_v8 = vld [vmem:[#allocation2] sm:$0xff]  ;;  %v147_v9 = vld [vmem:[#allocation7 + $0x10] sm:$0xff]  ;;  %v148_v10 = vld [vmem:[#allocation7 + $0x18] sm:$0xff] }
  0x39   :  { %v289_v11 = vpack.c.bf16 %v148_v10, %v147_v9  ;;  %v252_v12 = vld [vmem:[%s499_s2] ss:$0 sm:$0xff]  ;;  %s406_s2 = smov [#allocation8]  }
  0x3a   :  { %284 = vmatpush3.bf16.msra.mxu0 %v283_v4  ;;  %287 = vmatpush3.bf16.msra.mxu1 %v286_v7  ;;  %v254_v17 = vld [vmem:[%s501_s4] ss:$0 sm:$0xff]  ;;  %s242_s7 = sshll.u32 %s406_s2, 4  ;;  %s243_s7 = int_to_ptr.vmem [resolvable:$true] %s242_s7 }
  0x3b   :  { %288 = vmatprep.subr.bf16.mxu1 %v403_v0  ;;  %s370_s8 = scalar_lea.vmem %s243_s7, 128  ;;  %p375_p11 = scmp.lt.s32.totalorder %s243_s7, %s243_s7 }
  0x3c   :  { %p371_p10 = scmp.ne.s32.totalorder %s243_s7, %s370_s8  ;;  %p376_p12 = scmp.lt.s32.totalorder %s370_s8, %s370_s8 }
  0x3d   :  { %269 = vmatmul.mubr.msk.f32.vlgmr.msra.gmra.mrb[0].mxu0 %vm70_vm1, %v60_v8 }
  0x3e   :  { %290 = vmatpush3.bf16.msra.mxu1 %v289_v11  ;;  %p377_p13 = por %p376_p12, %p375_p11 }
  0x40   :  { %p378_p0 = pnand %p377_p13, %p371_p10 }
 0x110   :  { %v140_v13 = vpop.f32.mrb[0].mxu0 }
 0x111   :  { %v141_v14 = vadd.f32 %v252_v12, %v140_v13  ;;  %v270_v15 = vpop.f32.mrb[1].mxu0 }
 0x113   :  { %v144_v16 = vmax.f32 %v141_v14, 0.0 }
 0x115   :  { %280 = vmatmul.mubr.msk.f32.vlgmr.msra.gmra.mrb[0].mxu1 %vm156_vm2, %v144_v16 }
 0x1e8   :  { %v226_v18 = vpop.f32.mrb[0].mxu1 }
 0x1e9   :  { %v227_v19 = vadd.f32 %v254_v17, %v226_v18  ;;  %v281_v20 = vpop.f32.mrb[1].mxu1 }
 0x1eb   :  { %v230_v21 = vsub.f32 0.0, %v227_v19 }
 0x1ed   :  { %v231_v22 = vmul.f32 1.442695, %v230_v21 }
 0x1ef   :  { %300 = vpow2.f32 %v231_v22 }
 0x1f9   :  { %v301_v23 = vpop.eup %300 }
 0x1fa   :  { %v233_v24 = vadd.f32 1.0, %v301_v23 }
 0x1fc   :  { %302 = vrcp.f32 %v233_v24 }
 0x206   :  { %v303_v25 = vpop.eup %302 }
 0x207   :  { %235 = vst [vmem:[#allocation8] sm:$0xff] %v303_v25 }
 0x208   :  { %381 = shalt.err (!%p378_p0)
}
 0x209   :  { %s382_s10 = scalar_lea.hbm %s502_s5, 128 }
 0x20a   :  { %p383_p1 = scmp.ne.s32.totalorder %s502_s5, %s382_s10  ;;  %p386_p2 = scmp.lt.u32.totalorder %s382_s10, %s502_s5 }
 0x20c   :  { %p388_p3 = pnand %p386_p2, %p383_p1 }
 0x20e   :  { %391 = shalt.err (!%p388_p3)
}
 0x20f   :  { %245 = dma.vmem_to_hbm [thread:$0]  %s243_s7, 128, %s502_s5, [#allocation4]  }
 0x210   :  { %396 = dma.done.wait [#allocation4], 128  }
 0x211   :  { %397 = vsyncadd [#allocation4], 4294967168 }
 0x212   :  { %249 = vsyncpa [#allocation3], 1 }
 0x213   :  { %250 = vsyncpa [#allocation6], 1 }
 0x214   :  { %251 = vsyncpa [#allocation4], 1 }

</bundles_post_ra>
